<compile_context>
chip_gen: v5e
topology: v5e:2x2
jax: 0.10.0
libtpu: 0.0.40
codegen_flags: <defaults>
</compile_context>

<pallas_src>
import jax
import jax.numpy as jnp
from jax.experimental import pallas as pl
from jax.experimental.pallas import tpu as pltpu

IN_DIM = 28 * 28   # 784
H1 = 256
H2 = 196
H2_PAD = 256       # 196 padded up to a lane-dense 256
H3 = 128
OUT_DIM = 10


def _round_up(n, m):
    return ((n + m - 1) // m) * m


def ffn_kernel(x_ref, w1_ref, b1_ref, w2_ref, b2_ref, w3_ref, b3_ref,
               w4_ref, b4_ref, out_ref):
    # fc1 + relu  (bf16 operands, f32 accumulation)
    h = jnp.dot(x_ref[...], w1_ref[...], preferred_element_type=jnp.float32)
    h = jnp.maximum(h + b1_ref[...], 0.0)
    # fc2 + relu  (N padded 196 -> 256; padded cols have zero weight & bias -> relu(0)=0)
    h = jnp.dot(h.astype(jnp.bfloat16), w2_ref[...], preferred_element_type=jnp.float32)
    h = jnp.maximum(h + b2_ref[...], 0.0)
    # fc3 + relu  (padded rows of w3 are zero -> exact)
    h = jnp.dot(h.astype(jnp.bfloat16), w3_ref[...], preferred_element_type=jnp.float32)
    h = jnp.maximum(h + b3_ref[...], 0.0)
    # fc4
    logits = jnp.dot(h.astype(jnp.bfloat16), w4_ref[...],
                     preferred_element_type=jnp.float32) + b4_ref[...]
    # log_softmax over dim=1 (last dim), numerically stable
    m = jnp.max(logits, axis=-1, keepdims=True)
    lse = m + jnp.log(jnp.sum(jnp.exp(logits - m), axis=-1, keepdims=True))
    out_ref[...] = (logits - lse).astype(out_ref.dtype)


def ffn_forward(x, params, *, tile_b=512):
    """x: (B, 1, 28, 28) or (B, 784). Returns log-probs of shape (B, 10) in f32."""
    x = x.reshape(-1, IN_DIM).astype(jnp.float32)
    B = x.shape[0]
    (w1, b1), (w2, b2), (w3, b3), (w4, b4) = params

    # --- bf16 weights (f32 accumulation in kernel), f32 biases ------------------
    w1b = w1.astype(jnp.bfloat16)
    w4b = w4.astype(jnp.bfloat16)
    b1f = b1.astype(jnp.float32)
    b3f = b3.astype(jnp.float32)
    b4f = b4.astype(jnp.float32)
    # zero-pad the 196-wide hidden layer to 256 (exact through relu; see header)
    w2p = jnp.zeros((H1, H2_PAD), jnp.bfloat16).at[:, :H2].set(w2.astype(jnp.bfloat16))
    b2p = jnp.zeros((1, H2_PAD), jnp.float32).at[:, :H2].set(b2.astype(jnp.float32))
    w3p = jnp.zeros((H2_PAD, H3), jnp.bfloat16).at[:H2, :].set(w3.astype(jnp.bfloat16))

    # --- batch tiling: pad B up so the tile divides it evenly -------------------
    tb = min(tile_b, _round_up(B, 8))       # small batches -> single full-array tile
    b_pad = _round_up(B, tb)
    x_bf = x.astype(jnp.bfloat16)
    if b_pad != B:
        x_bf = jnp.zeros((b_pad, IN_DIM), jnp.bfloat16).at[:B].set(x_bf)
    grid = (b_pad // tb,)

    def resident(a):
        # weights/biases: same block every grid step -> stay VMEM-resident
        nd = a.ndim
        return pl.BlockSpec(a.shape, lambda i, _nd=nd: (0,) * _nd)

    weights = (w1b, b1f, w2p, b2p, w3p, b3f, w4b, b4f)
    in_specs = [pl.BlockSpec((tb, IN_DIM), lambda i: (i, 0))] + \
               [resident(a) for a in weights]
    out_spec = pl.BlockSpec((tb, OUT_DIM), lambda i: (i, 0))

    # advisory cost estimate for the XLA scheduler
    mac = IN_DIM * H1 + H1 * H2_PAD + H2_PAD * H3 + H3 * OUT_DIM
    cost = pl.CostEstimate(
        flops=2 * b_pad * mac,
        transcendentals=b_pad * (OUT_DIM + 1),          # exp per logit + log per row
        bytes_accessed=(b_pad * IN_DIM * 2 + b_pad * OUT_DIM * 4
                        + mac * 2 + (H1 + H2_PAD + H3 + OUT_DIM) * 4),
    )

    out = pl.pallas_call(
        ffn_kernel,
        out_shape=jax.ShapeDtypeStruct((b_pad, OUT_DIM), jnp.float32),
        grid=grid,
        in_specs=in_specs,
        out_specs=out_spec,
        compiler_params=pltpu.CompilerParams(
            dimension_semantics=("parallel",),   # shard batch tiles across TCs (v7x)
            vmem_limit_bytes=32 << 20,           # safe on v7x's 64 MiB physical VMEM
        ),
        cost_estimate=cost,
    )(x_bf, *weights)
    return out[:B]


def init_params(key):
    """Deterministic Kaiming-uniform-ish init matching nn.Linear shapes ((in, out) layout)."""
    dims = [(IN_DIM, H1), (H1, H2), (H2, H3), (H3, OUT_DIM)]
    params = []
    for fan_in, fan_out in dims:
        kw, kb, key = jax.random.split(key, 3)
        bound = 1.0 / jnp.sqrt(fan_in)
        w = jax.random.uniform(kw, (fan_in, fan_out), jnp.float32, -bound, bound)
        b = jax.random.uniform(kb, (1, fan_out), jnp.float32, -bound, bound)
        params.append((w, b))
    return params


def _reference(x, params):
    """Pure-JAX f32 reference of the same forward (eval-mode dropout = identity)."""
    x = x.reshape(-1, IN_DIM).astype(jnp.float32)
    (w1, b1), (w2, b2), (w3, b3), (w4, b4) = params
    h = jnp.maximum(x @ w1 + b1, 0.0)
    h = jnp.maximum(h @ w2 + b2, 0.0)
    h = jnp.maximum(h @ w3 + b3, 0.0)
    logits = h @ w4 + b4
    return jax.nn.log_softmax(logits, axis=-1)


if __name__ == "__main__":
    key = jax.random.PRNGKey(0)
    k_x, k_p = jax.random.split(key)

    # small batch of MNIST-like inputs: (B, 1, 28, 28)
    B = 8
    x = jax.random.normal(k_x, (B, 1, 28, 28), dtype=jnp.float32)
    params = init_params(k_p)

    out = ffn_forward(x, params)
    out = jax.block_until_ready(out)

    assert out.shape == (B, OUT_DIM)
    # log_softmax rows should exp-sum to ~1
    row_sums = jnp.exp(out).sum(axis=-1)
    assert bool(jnp.all(jnp.abs(row_sums - 1.0) < 1e-3))
    # match the pure-JAX f32 reference within bf16 tolerance
    ref = _reference(x, params)
    assert bool(jnp.max(jnp.abs(out - ref)) < 5e-2)

    print("KERNEL_OK")
</pallas_src>

<mosaic_0001>
module attributes {stable_mosaic.version = 11 : i64} {
  func.func @ffn_kernel(%arg0: i32, %arg1: memref<8x784xbf16, #tpu.memory_space<vmem>>, %arg2: memref<784x256xbf16, #tpu.memory_space<vmem>>, %arg3: memref<1x256xf32, #tpu.memory_space<vmem>>, %arg4: memref<256x256xbf16, #tpu.memory_space<vmem>>, %arg5: memref<1x256xf32, #tpu.memory_space<vmem>>, %arg6: memref<256x128xbf16, #tpu.memory_space<vmem>>, %arg7: memref<1x128xf32, #tpu.memory_space<vmem>>, %arg8: memref<128x10xbf16, #tpu.memory_space<vmem>>, %arg9: memref<1x10xf32, #tpu.memory_space<vmem>>, %arg10: memref<8x10xf32, #tpu.memory_space<vmem>>) attributes {dimension_semantics = [#tpu.dimension_semantics<parallel>], iteration_bounds = array<i64: 1>, scalar_prefetch = 0 : i64, scratch_operands = 0 : i64, tpu.core_type = #tpu.core_type<tc>, window_params = [{transform_indices = @transform_0, window_bounds = array<i64: 8, 784>}, {pipeline_mode = #tpu.pipeline_mode<synchronous>, transform_indices = @transform_1, window_bounds = array<i64: 784, 256>}, {pipeline_mode = #tpu.pipeline_mode<synchronous>, transform_indices = @transform_2, window_bounds = array<i64: 1, 256>}, {pipeline_mode = #tpu.pipeline_mode<synchronous>, transform_indices = @transform_3, window_bounds = array<i64: 256, 256>}, {pipeline_mode = #tpu.pipeline_mode<synchronous>, transform_indices = @transform_4, window_bounds = array<i64: 1, 256>}, {pipeline_mode = #tpu.pipeline_mode<synchronous>, transform_indices = @transform_5, window_bounds = array<i64: 256, 128>}, {pipeline_mode = #tpu.pipeline_mode<synchronous>, transform_indices = @transform_6, window_bounds = array<i64: 1, 128>}, {pipeline_mode = #tpu.pipeline_mode<synchronous>, transform_indices = @transform_7, window_bounds = array<i64: 128, 10>}, {pipeline_mode = #tpu.pipeline_mode<synchronous>, transform_indices = @transform_8, window_bounds = array<i64: 1, 10>}, {transform_indices = @transform_9, window_bounds = array<i64: 8, 10>}]} {
    %c0 = arith.constant 0 : index
    %c0_0 = arith.constant 0 : index
    %0 = vector.load %arg1[%c0, %c0_0] : memref<8x784xbf16, #tpu.memory_space<vmem>>, vector<8x784xbf16>
    %c0_1 = arith.constant 0 : index
    %c0_2 = arith.constant 0 : index
    %1 = vector.load %arg2[%c0_1, %c0_2] : memref<784x256xbf16, #tpu.memory_space<vmem>>, vector<784x256xbf16>
    %cst = arith.constant dense<0.000000e+00> : vector<8x256xf32>
    %2 = tpu.matmul %0, %1, %cst {dimension_numbers = #tpu.dot_dimension_numbers<[1], [0], [0], [1], [0, 0, 1, 1], [], []>} : vector<8x784xbf16>, vector<784x256xbf16>, vector<8x256xf32> -> vector<8x256xf32>
    %c0_3 = arith.constant 0 : index
    %c0_4 = arith.constant 0 : index
    %3 = vector.load %arg3[%c0_3, %c0_4] : memref<1x256xf32, #tpu.memory_space<vmem>>, vector<1x256xf32>
    %4 = vector.broadcast %3 : vector<1x256xf32> to vector<8x256xf32>
    %5 = arith.addf %2, %4 : vector<8x256xf32>
    %cst_5 = arith.constant 0.000000e+00 : f32
    %6 = vector.broadcast %cst_5 : f32 to vector<8x256xf32>
    %7 = arith.maximumf %5, %6 : vector<8x256xf32>
    %8 = arith.truncf %7 : vector<8x256xf32> to vector<8x256xbf16>
    %c0_6 = arith.constant 0 : index
    %c0_7 = arith.constant 0 : index
    %9 = vector.load %arg4[%c0_6, %c0_7] : memref<256x256xbf16, #tpu.memory_space<vmem>>, vector<256x256xbf16>
    %cst_8 = arith.constant dense<0.000000e+00> : vector<8x256xf32>
    %10 = tpu.matmul %8, %9, %cst_8 {dimension_numbers = #tpu.dot_dimension_numbers<[1], [0], [0], [1], [0, 0, 1, 1], [], []>} : vector<8x256xbf16>, vector<256x256xbf16>, vector<8x256xf32> -> vector<8x256xf32>
    %c0_9 = arith.constant 0 : index
    %c0_10 = arith.constant 0 : index
    %11 = vector.load %arg5[%c0_9, %c0_10] : memref<1x256xf32, #tpu.memory_space<vmem>>, vector<1x256xf32>
    %12 = vector.broadcast %11 : vector<1x256xf32> to vector<8x256xf32>
    %13 = arith.addf %10, %12 : vector<8x256xf32>
    %cst_11 = arith.constant 0.000000e+00 : f32
    %14 = vector.broadcast %cst_11 : f32 to vector<8x256xf32>
    %15 = arith.maximumf %13, %14 : vector<8x256xf32>
    %16 = arith.truncf %15 : vector<8x256xf32> to vector<8x256xbf16>
    %c0_12 = arith.constant 0 : index
    %c0_13 = arith.constant 0 : index
    %17 = vector.load %arg6[%c0_12, %c0_13] : memref<256x128xbf16, #tpu.memory_space<vmem>>, vector<256x128xbf16>
    %cst_14 = arith.constant dense<0.000000e+00> : vector<8x128xf32>
    %18 = tpu.matmul %16, %17, %cst_14 {dimension_numbers = #tpu.dot_dimension_numbers<[1], [0], [0], [1], [0, 0, 1, 1], [], []>} : vector<8x256xbf16>, vector<256x128xbf16>, vector<8x128xf32> -> vector<8x128xf32>
    %c0_15 = arith.constant 0 : index
    %c0_16 = arith.constant 0 : index
    %19 = vector.load %arg7[%c0_15, %c0_16] : memref<1x128xf32, #tpu.memory_space<vmem>>, vector<1x128xf32>
    %20 = vector.broadcast %19 : vector<1x128xf32> to vector<8x128xf32>
    %21 = arith.addf %18, %20 : vector<8x128xf32>
    %cst_17 = arith.constant 0.000000e+00 : f32
    %22 = vector.broadcast %cst_17 : f32 to vector<8x128xf32>
    %23 = arith.maximumf %21, %22 : vector<8x128xf32>
    %24 = arith.truncf %23 : vector<8x128xf32> to vector<8x128xbf16>
    %c0_18 = arith.constant 0 : index
    %c0_19 = arith.constant 0 : index
    %25 = vector.load %arg8[%c0_18, %c0_19] : memref<128x10xbf16, #tpu.memory_space<vmem>>, vector<128x10xbf16>
    %cst_20 = arith.constant dense<0.000000e+00> : vector<8x10xf32>
    %26 = tpu.matmul %24, %25, %cst_20 {dimension_numbers = #tpu.dot_dimension_numbers<[1], [0], [0], [1], [0, 0, 1, 1], [], []>} : vector<8x128xbf16>, vector<128x10xbf16>, vector<8x10xf32> -> vector<8x10xf32>
    %c0_21 = arith.constant 0 : index
    %c0_22 = arith.constant 0 : index
    %27 = vector.load %arg9[%c0_21, %c0_22] : memref<1x10xf32, #tpu.memory_space<vmem>>, vector<1x10xf32>
    %28 = vector.broadcast %27 : vector<1x10xf32> to vector<8x10xf32>
    %29 = arith.addf %26, %28 : vector<8x10xf32>
    %cst_23 = arith.constant dense<0xFF800000> : vector<8xf32>
    %30 = vector.multi_reduction <maximumf>, %29, %cst_23 [1] : vector<8x10xf32> to vector<8xf32>
    %31 = vector.shape_cast %30 : vector<8xf32> to vector<8x1xf32>
    %32 = vector.broadcast %31 : vector<8x1xf32> to vector<8x10xf32>
    %33 = arith.subf %29, %32 : vector<8x10xf32>
    %34 = math.exp %33 : vector<8x10xf32>
    %cst_24 = arith.constant dense<0.000000e+00> : vector<8xf32>
    %35 = vector.multi_reduction <add>, %34, %cst_24 [1] : vector<8x10xf32> to vector<8xf32>
    %36 = vector.shape_cast %35 : vector<8xf32> to vector<8x1xf32>
    %37 = math.log %36 : vector<8x1xf32>
    %38 = arith.addf %31, %37 : vector<8x1xf32>
    %39 = vector.broadcast %38 : vector<8x1xf32> to vector<8x10xf32>
    %40 = arith.subf %29, %39 : vector<8x10xf32>
    %c0_25 = arith.constant 0 : index
    %c0_26 = arith.constant 0 : index
    %41 = vector.load %arg10[%c0_25, %c0_26] : memref<8x10xf32, #tpu.memory_space<vmem>>, vector<8x10xf32>
    tpu.vector_store %arg10[%c0_25, %c0_26], %40 {strides = array<i32>} : memref<8x10xf32, #tpu.memory_space<vmem>>, vector<8x10xf32>,
    return
  }
  func.func @transform_0(%arg0: i32) -> (i32, i32) {
    %c0_i32 = arith.constant 0 : i32
    %c0_i32_0 = arith.constant 0 : i32
    return %arg0, %c0_i32 : i32, i32
  }
  func.func @transform_1(%arg0: i32) -> (i32, i32) {
    %c0_i32 = arith.constant 0 : i32
    %c0_i32_0 = arith.constant 0 : i32
    %c0_i32_1 = arith.constant 0 : i32
    return %c0_i32, %c0_i32_0 : i32, i32
  }
  func.func @transform_2(%arg0: i32) -> (i32, i32) {
    %c0_i32 = arith.constant 0 : i32
    %c0_i32_0 = arith.constant 0 : i32
    %c0_i32_1 = arith.constant 0 : i32
    return %c0_i32, %c0_i32_0 : i32, i32
  }
  func.func @transform_3(%arg0: i32) -> (i32, i32) {
    %c0_i32 = arith.constant 0 : i32
    %c0_i32_0 = arith.constant 0 : i32
    %c0_i32_1 = arith.constant 0 : i32
    return %c0_i32, %c0_i32_0 : i32, i32
  }
  func.func @transform_4(%arg0: i32) -> (i32, i32) {
    %c0_i32 = arith.constant 0 : i32
    %c0_i32_0 = arith.constant 0 : i32
    %c0_i32_1 = arith.constant 0 : i32
    return %c0_i32, %c0_i32_0 : i32, i32
  }
  func.func @transform_5(%arg0: i32) -> (i32, i32) {
    %c0_i32 = arith.constant 0 : i32
    %c0_i32_0 = arith.constant 0 : i32
    %c0_i32_1 = arith.constant 0 : i32
    return %c0_i32, %c0_i32_0 : i32, i32
  }
  func.func @transform_6(%arg0: i32) -> (i32, i32) {
    %c0_i32 = arith.constant 0 : i32
    %c0_i32_0 = arith.constant 0 : i32
    %c0_i32_1 = arith.constant 0 : i32
    return %c0_i32, %c0_i32_0 : i32, i32
  }
  func.func @transform_7(%arg0: i32) -> (i32, i32) {
    %c0_i32 = arith.constant 0 : i32
    %c0_i32_0 = arith.constant 0 : i32
    %c0_i32_1 = arith.constant 0 : i32
    return %c0_i32, %c0_i32_0 : i32, i32
  }
  func.func @transform_8(%arg0: i32) -> (i32, i32) {
    %c0_i32 = arith.constant 0 : i32
    %c0_i32_0 = arith.constant 0 : i32
    %c0_i32_1 = arith.constant 0 : i32
    return %c0_i32, %c0_i32_0 : i32, i32
  }
  func.func @transform_9(%arg0: i32) -> (i32, i32) {
    %c0_i32 = arith.constant 0 : i32
    %c0_i32_0 = arith.constant 0 : i32
    return %arg0, %c0_i32 : i32, i32
  }
}

</mosaic_0001>

<bundles_post_ra>
// kernel: tpu_custom_call.1
= control target key start
LH: loop header
LB: loop body
LE: loop exit
PB: predicated region body
PF: predicated region fallthrough
CT: control target
= control target key end

     0   :  { %14 = vsyncpa [#allocation3], 0  ;;  %s2464_s0 = inlined_call_operand.vmem [shape: bf16[8,784], index: 0, kind: input, shape index: {}]   ;;  %s2465_s1 = inlined_call_operand.hbm [shape: bf16[784,256], index: 1, kind: input, shape index: {}]   ;;  %s2466_s2 = inlined_call_operand.vmem [shape: f32[1,256], index: 2, kind: input, shape index: {}]   ;;  %s2467_s3 = inlined_call_operand.hbm [shape: bf16[256,256], index: 3, kind: input, shape index: {}]   ;;  %s2468_s4 = inlined_call_operand.vmem [shape: f32[1,256], index: 4, kind: input, shape index: {}]   ;;  %s2469_s5 = inlined_call_operand.hbm [shape: bf16[256,128], index: 5, kind: input, shape index: {}]   ;;  %s2470_s6 = inlined_call_operand.vmem [shape: f32[1,128], index: 6, kind: input, shape index: {}]   ;;  %s2471_s7 = inlined_call_operand.vmem [shape: bf16[128,10], index: 7, kind: input, shape index: {}]   ;;  %s2472_s8 = inlined_call_operand.vmem [shape: f32[1,10], index: 8, kind: input, shape index: {}]   ;;  %s2473_s9 = inlined_call_operand.hbm [shape: f32[8,10], index: 9, kind: output, shape index: {}]  }
   0x1   :  { %15 = vsyncpa [#allocation6], 0 }
   0x2   :  { %16 = vsyncpa [#allocation4], 0  ;;  %s38_s11 = sshll.u32 %s2467_s3, 4  ;;  %s2309_s12 = smov [#allocation5]   ;;  %s39_s11 = int_to_ptr.hbm [resolvable:$true] %s38_s11 }
   0x3   :  { %s40_s13 = sshll.u32 %s2309_s12, 4  ;;  %s23_s16 = sshll.u32 %s2465_s1, 4  ;;  %s41_s13 = int_to_ptr.vmem [resolvable:$true] %s40_s13  ;;  %s24_s16 = int_to_ptr.hbm [resolvable:$true] %s23_s16 }
   0x4   :  { %s2310_s17 = smov 128   ;;  %s2311_s18 = smov 8  }
   0x5   :  { %46 = dma.hbm_to_vmem [thread:$0]  %s39_s11, 4096, %s41_s13, [#allocation6], %s2310_s17, %s2310_s17, %s2311_s18  }
   0x6   :  { %s2312_s19 = smov [#allocation2]   ;;  %s53_s23 = sshll.u32 %s2469_s5, 4  ;;  %s54_s23 = int_to_ptr.hbm [resolvable:$true] %s53_s23 }
   0x7   :  { %s25_s20 = sshll.u32 %s2312_s19, 4  ;;  %s2313_s3 = smov [#allocation7]   ;;  %s26_s20 = int_to_ptr.vmem [resolvable:$true] %s25_s20 }
   0x8   :  { %31 = dma.hbm_to_vmem [thread:$0]  %s24_s16, 12544, %s26_s20, [#allocation3], %s2310_s17, %s2310_s17, %s2311_s18  }
   0x9   :  { %s55_s24 = sshll.u32 %s2313_s3, 4  ;;  %s2314_s25 = smov 64   ;;  %s56_s24 = int_to_ptr.vmem [resolvable:$true] %s55_s24 }
   0xa   :  { %s2315_s26 = smov 4  }
   0xb   :  { %61 = dma.hbm_to_vmem [thread:$0]  %s54_s23, 2048, %s56_s24, [#allocation6], %s2314_s25, %s2314_s25, %s2315_s26  }
   0xc   :  { %2303 = dma.done.wait [#allocation3], 12544  }
   0xd   :  { %2304 = vsyncadd [#allocation3], 4294954752 }
   0xe   :  { %2305 = dma.done.wait [#allocation6], 6144  }
   0xf   :  { %2306 = vsyncadd [#allocation6], 4294961152  ;;  %v1479_v0 = vld [vmem:[#allocation2 + $0x70] sm:$0xf]  ;;  %v2054_v1 = vld [vmem:[#allocation2 + $0x74] sm:$0xf0] }
  0x10   :  { %v1607_v2 = vld [vmem:[#allocation2 + $0x170] sm:$0xf]  ;;  %v1480_v3 = vor.u32 %v2054_v1, %v1479_v0  ;;  %v2086_v4 = vld [vmem:[#allocation2 + $0x174] sm:$0xf0]  ;;  %v1471_v11 = vld [vmem:[#allocation2 + $0x60] sm:$0xf] }
  0x11   :  { %v1671_v5 = vld [vmem:[#allocation2 + $0x1f0] sm:$0xf]  ;;  %v2102_v6 = vld [vmem:[#allocation2 + $0x1f4] sm:$0xf0]  ;;  %v1608_v7 = vor.u32 %v2086_v4, %v1607_v2  ;;  %v2052_v13 = vld [vmem:[#allocation2 + $0x64] sm:$0xf0] }
  0x12   :  { %v1672_v8 = vor.u32 %v2102_v6, %v1671_v5  ;;  %v1543_v9 = vld [vmem:[#allocation2 + $0xf0] sm:$0xf]  ;;  %v2070_v10 = vld [vmem:[#allocation2 + $0xf4] sm:$0xf0]  ;;  %707 = vmatpush.bf16.msra.mxu0 %v1480_v3  ;;  %v1599_v14 = vld [vmem:[#allocation2 + $0x160] sm:$0xf]  ;;  %v1472_v16 = vor.u32 %v2052_v13, %v1471_v11 }
  0x13   :  { %v1544_v12 = vor.u32 %v2070_v10, %v1543_v9  ;;  %v2084_v15 = vld [vmem:[#allocation2 + $0x164] sm:$0xf0]  ;;  %733 = vmatpush.bf16.msra.mxu2 %v1608_v7  ;;  %v1663_v18 = vld [vmem:[#allocation2 + $0x1e0] sm:$0xf]  ;;  %v1463_v23 = vld [vmem:[#allocation2 + $0x50] sm:$0xf] }
  0x14   :  { %746 = vmatpush.bf16.msra.mxu3 %v1672_v8  ;;  %v1600_v17 = vor.u32 %v2084_v15, %v1599_v14  ;;  %v2100_v19 = vld [vmem:[#allocation2 + $0x1e4] sm:$0xf0]  ;;  %v1535_v20 = vld [vmem:[#allocation2 + $0xe0] sm:$0xf]  ;;  %v2050_v24 = vld [vmem:[#allocation2 + $0x54] sm:$0xf0] }
  0x15   :  { %720 = vmatpush.bf16.msra.mxu1 %v1544_v12  ;;  %v1664_v21 = vor.u32 %v2100_v19, %v1663_v18  ;;  %v2068_v22 = vld [vmem:[#allocation2 + $0xe4] sm:$0xf0]  ;;  %v1591_v26 = vld [vmem:[#allocation2 + $0x150] sm:$0xf]  ;;  %v2082_v27 = vld [vmem:[#allocation2 + $0x154] sm:$0xf0]  ;;  %v1464_v29 = vor.u32 %v2050_v24, %v1463_v23 }
  0x16   :  { %v1536_v25 = vor.u32 %v2068_v22, %v1535_v20  ;;  %v1655_v28 = vld [vmem:[#allocation2 + $0x1d0] sm:$0xf]  ;;  %708 = vmatpush.bf16.msra.mxu0 %v1472_v16  ;;  %v2098_v30 = vld [vmem:[#allocation2 + $0x1d4] sm:$0xf0]  ;;  %v1592_v33 = vor.u32 %v2082_v27, %v1591_v26  ;;  %v1455_v35 = vld [vmem:[#allocation2 + $0x40] sm:$0xf] }
  0x17   :  { %v1527_v31 = vld [vmem:[#allocation2 + $0xd0] sm:$0xf]  ;;  %v2066_v32 = vld [vmem:[#allocation2 + $0xd4] sm:$0xf0]  ;;  %734 = vmatpush.bf16.msra.mxu2 %v1600_v17  ;;  %v1656_v34 = vor.u32 %v2098_v30, %v1655_v28  ;;  %v2048_v36 = vld [vmem:[#allocation2 + $0x44] sm:$0xf0] }
  0x18   :  { %747 = vmatpush.bf16.msra.mxu3 %v1664_v21  ;;  %v1583_v37 = vld [vmem:[#allocation2 + $0x140] sm:$0xf]  ;;  %v1528_v38 = vor.u32 %v2066_v32, %v1527_v31  ;;  %v2080_v39 = vld [vmem:[#allocation2 + $0x144] sm:$0xf0]  ;;  %v1456_v44 = vor.u32 %v2048_v36, %v1455_v35  ;;  %v1447_v47 = vld [vmem:[#allocation2 + $0x30] sm:$0xf] }
  0x19   :  { %721 = vmatpush.bf16.msra.mxu1 %v1536_v25  ;;  %v1647_v40 = vld [vmem:[#allocation2 + $0x1c0] sm:$0xf]  ;;  %v2096_v41 = vld [vmem:[#allocation2 + $0x1c4] sm:$0xf0]  ;;  %v1584_v45 = vor.u32 %v2080_v39, %v1583_v37  ;;  %v2046_v48 = vld [vmem:[#allocation2 + $0x34] sm:$0xf0] }
  0x1a   :  { %v1519_v42 = vld [vmem:[#allocation2 + $0xc0] sm:$0xf]  ;;  %v2064_v43 = vld [vmem:[#allocation2 + $0xc4] sm:$0xf0]  ;;  %709 = vmatpush.bf16.msra.mxu0 %v1464_v29  ;;  %v1648_v46 = vor.u32 %v2096_v41, %v1647_v40  ;;  %v1575_v49 = vld [vmem:[#allocation2 + $0x130] sm:$0xf]  ;;  %v1448_v56 = vor.u32 %v2046_v48, %v1447_v47 }
  0x1b   :  { %735 = vmatpush.bf16.msra.mxu2 %v1592_v33  ;;  %v1520_v50 = vor.u32 %v2064_v43, %v1519_v42  ;;  %v2078_v51 = vld [vmem:[#allocation2 + $0x134] sm:$0xf0]  ;;  %v1639_v52 = vld [vmem:[#allocation2 + $0x1b0] sm:$0xf]  ;;  %v1439_v59 = vld [vmem:[#allocation2 + $0x20] sm:$0xf] }
  0x1c   :  { %748 = vmatpush.bf16.msra.mxu3 %v1656_v34  ;;  %v2094_v53 = vld [vmem:[#allocation2 + $0x1b4] sm:$0xf0]  ;;  %v1511_v54 = vld [vmem:[#allocation2 + $0xb0] sm:$0xf]  ;;  %v1576_v57 = vor.u32 %v2078_v51, %v1575_v49  ;;  %v2044_v60 = vld [vmem:[#allocation2 + $0x24] sm:$0xf0] }
  0x1d   :  { %722 = vmatpush.bf16.msra.mxu1 %v1528_v38  ;;  %v2062_v55 = vld [vmem:[#allocation2 + $0xb4] sm:$0xf0]  ;;  %v1640_v58 = vor.u32 %v2094_v53, %v1639_v52  ;;  %v1567_v61 = vld [vmem:[#allocation2 + $0x120] sm:$0xf]  ;;  %v2076_v63 = vld [vmem:[#allocation2 + $0x124] sm:$0xf0]  ;;  %v1440_v4 = vor.u32 %v2044_v60, %v1439_v59 }
  0x1e   :  { %710 = vmatpush.bf16.msra.mxu0 %v1456_v44  ;;  %v1512_v62 = vor.u32 %v2062_v55, %v1511_v54  ;;  %v1631_v0 = vld [vmem:[#allocation2 + $0x1a0] sm:$0xf]  ;;  %v2092_v1 = vld [vmem:[#allocation2 + $0x1a4] sm:$0xf0]  ;;  %v1568_v5 = vor.u32 %v2076_v63, %v1567_v61  ;;  %v1431_v7 = vld [vmem:[#allocation2 + $0x10] sm:$0xf] }
  0x1f   :  { %736 = vmatpush.bf16.msra.mxu2 %v1584_v45  ;;  %v1503_v2 = vld [vmem:[#allocation2 + $0xa0] sm:$0xf]  ;;  %v2060_v3 = vld [vmem:[#allocation2 + $0xa4] sm:$0xf0]  ;;  %v1632_v6 = vor.u32 %v2092_v1, %v1631_v0  ;;  %v2042_v8 = vld [vmem:[#allocation2 + $0x14] sm:$0xf0] }
  0x20   :  { %749 = vmatpush.bf16.msra.mxu3 %v1648_v46  ;;  %v1559_v9 = vld [vmem:[#allocation2 + $0x110] sm:$0xf]  ;;  %v1504_v10 = vor.u32 %v2060_v3, %v1503_v2  ;;  %v2074_v11 = vld [vmem:[#allocation2 + $0x114] sm:$0xf0]  ;;  %v1423_v16 = vld [vmem:[#allocation2] sm:$0xf]  ;;  %v1432_v17 = vor.u32 %v2042_v8, %v1431_v7 }
  0x21   :  { %723 = vmatpush.bf16.msra.mxu1 %v1520_v50  ;;  %v1623_v12 = vld [vmem:[#allocation2 + $0x190] sm:$0xf]  ;;  %v2090_v13 = vld [vmem:[#allocation2 + $0x194] sm:$0xf0]  ;;  %v2040_v18 = vld [vmem:[#allocation2 + $0x4] sm:$0xf0]  ;;  %v1560_v21 = vor.u32 %v2074_v11, %v1559_v9 }
  0x22   :  { %711 = vmatpush.bf16.msra.mxu0 %v1448_v56  ;;  %v1495_v14 = vld [vmem:[#allocation2 + $0x90] sm:$0xf]  ;;  %v2058_v15 = vld [vmem:[#allocation2 + $0x94] sm:$0xf0]  ;;  %v1551_v19 = vld [vmem:[#allocation2 + $0x100] sm:$0xf]  ;;  %v1624_v22 = vor.u32 %v2090_v13, %v1623_v12  ;;  %v1424_v33 = vor.u32 %v2040_v18, %v1423_v16 }
  0x23   :  { %737 = vmatpush.bf16.msra.mxu2 %v1576_v57  ;;  %v2072_v20 = vld [vmem:[#allocation2 + $0x104] sm:$0xf0]  ;;  %v1615_v23 = vld [vmem:[#allocation2 + $0x180] sm:$0xf]  ;;  %v1496_v26 = vor.u32 %v2058_v15, %v1495_v14  ;;  %v1735_v27 = vld [vmem:[#allocation2 + $0x270] sm:$0xf] }
  0x24   :  { %750 = vmatpush.bf16.msra.mxu3 %v1640_v58  ;;  %v2088_v24 = vld [vmem:[#allocation2 + $0x184] sm:$0xf0]  ;;  %v2118_v28 = vld [vmem:[#allocation2 + $0x274] sm:$0xf0]  ;;  %v2053_v29 = vld [vmem:[#allocation2 + $0x74] sm:$0xf]  ;;  %v1552_v38 = vor.u32 %v2072_v20, %v1551_v19 }
  0x25   :  { %724 = vmatpush.bf16.msra.mxu1 %v1512_v62  ;;  %v82_v25 = vld [vmem:[%s2464_s0 + $0x8] sm:$0xff]  ;;  %v1481_v30 = vld [vmem:[#allocation2 + $0x78] sm:$0xf0]  ;;  %v1487_v31 = vld [vmem:[#allocation2 + $0x80] sm:$0xf]  ;;  %v1616_v39 = vor.u32 %v2088_v24, %v1615_v23  ;;  %v1736_v43 = vor.u32 %v2118_v28, %v1735_v27  ;;  %vm703_vm0 = vcmask 130048  }
  0x26   :  { %712 = vmatpush.bf16.msra.mxu0 %v1440_v4  ;;  %v81_v32 = vld [vmem:[%s2464_s0] sm:$0xff]  ;;  %v2056_v34 = vld [vmem:[#allocation2 + $0x84] sm:$0xf0]  ;;  %v195_v35 = vunpack.c.l.b16 %v82_v25  ;;  %v1799_v40 = vld [vmem:[#allocation2 + $0x2f0] sm:$0xf]  ;;  %v1484_v44 = vor.u32 %v2053_v29, %v1481_v30  ;;  %v196_v53 = vunpack.c.h.b16 %v82_v25  ;;  %vm1388_vm1 = vcmask 80896  }
  0x27   :  { %738 = vmatpush.bf16.msra.mxu2 %v1568_v5  ;;  %v1807_v36 = vld [vmem:[#allocation2 + $0x300] sm:$0xf]  ;;  %v2136_v37 = vld [vmem:[#allocation2 + $0x304] sm:$0xf0]  ;;  %v2134_v41 = vld [vmem:[#allocation2 + $0x2f4] sm:$0xf0]  ;;  %v193_v42 = vunpack.c.l.b16 %v81_v32  ;;  %v1488_v48 = vor.u32 %v2056_v34, %v1487_v31  ;;  %v194_v54 = vunpack.c.h.b16 %v81_v32 }
  0x28   :  { %751 = vmatpush.bf16.msra.mxu3 %v1632_v6  ;;  %v2069_v45 = vld [vmem:[#allocation2 + $0xf4] sm:$0xf]  ;;  %v1545_v46 = vld [vmem:[#allocation2 + $0xf8] sm:$0xf0]  ;;  %v1727_v47 = vld [vmem:[#allocation2 + $0x260] sm:$0xf]  ;;  %v1808_v49 = vor.u32 %v2136_v37, %v1807_v36  ;;  %v2382_v55 = vpack.c.b16 %v195_v35, %v195_v35  ;;  %v1800_v56 = vor.u32 %v2134_v41, %v1799_v40  ;;  %v2386_v2 = vpack.c.b16 %v196_v53, %v196_v53 }
  0x29   :  { %725 = vmatpush.bf16.msra.mxu1 %v1504_v10  ;;  %v2116_v50 = vld [vmem:[#allocation2 + $0x264] sm:$0xf0]  ;;  %v2051_v51 = vld [vmem:[#allocation2 + $0x64] sm:$0xf]  ;;  %v1473_v52 = vld [vmem:[#allocation2 + $0x68] sm:$0xf0]  ;;  %v1548_v57 = vor.u32 %v2069_v45, %v1545_v46  ;;  %v2384_v58 = vpack.c.b16 %v193_v42, %v193_v42  ;;  %v2388_v3 = vpack.c.b16 %v194_v54, %v194_v54 }
  0x2a   :  { %713 = vmatpush.bf16.msra.mxu0 %v1432_v17  ;;  %v1791_v59 = vld [vmem:[#allocation2 + $0x2e0] sm:$0xf]  ;;  %v2132_v60 = vld [vmem:[#allocation2 + $0x2e4] sm:$0xf0]  ;;  %v1728_v61 = vor.u32 %v2116_v50, %v1727_v47  ;;  %v1476_v62 = vor.u32 %v2051_v51, %v1473_v52  ;;  %v2067_v63 = vld [vmem:[#allocation2 + $0xe4] sm:$0xf] }
  0x2b   :  { %739 = vmatpush.bf16.msra.mxu2 %v1560_v21  ;;  %v1537_v0 = vld [vmem:[#allocation2 + $0xe8] sm:$0xf0]  ;;  %v1719_v1 = vld [vmem:[#allocation2 + $0x250] sm:$0xf]  ;;  %v2114_v4 = vld [vmem:[#allocation2 + $0x254] sm:$0xf0]  ;;  %v1792_v7 = vor.u32 %v2132_v60, %v1791_v59 }
  0x2c   :  { %752 = vmatpush.bf16.msra.mxu3 %v1624_v22  ;;  %v2049_v5 = vld [vmem:[#allocation2 + $0x54] sm:$0xf]  ;;  %v1465_v6 = vld [vmem:[#allocation2 + $0x58] sm:$0xf0]  ;;  %v1540_v8 = vor.u32 %v2067_v63, %v1537_v0  ;;  %v1783_v9 = vld [vmem:[#allocation2 + $0x2d0] sm:$0xf]  ;;  %v1720_v11 = vor.u32 %v2114_v4, %v1719_v1 }
  0x2d   :  { %726 = vmatpush.bf16.msra.mxu1 %v1496_v26  ;;  %v2130_v10 = vld [vmem:[#allocation2 + $0x2d4] sm:$0xf0]  ;;  %v1468_v12 = vor.u32 %v2049_v5, %v1465_v6  ;;  %v2065_v13 = vld [vmem:[#allocation2 + $0xd4] sm:$0xf]  ;;  %v1529_v14 = vld [vmem:[#allocation2 + $0xd8] sm:$0xf0] }
  0x2e   :  { %714 = vmatpush.bf16.msra.mxu0 %v1424_v33  ;;  %v1711_v15 = vld [vmem:[#allocation2 + $0x240] sm:$0xf]  ;;  %v2112_v16 = vld [vmem:[#allocation2 + $0x244] sm:$0xf0]  ;;  %v2047_v17 = vld [vmem:[#allocation2 + $0x44] sm:$0xf]  ;;  %v1784_v19 = vor.u32 %v2130_v10, %v1783_v9  ;;  %v1532_v20 = vor.u32 %v2065_v13, %v1529_v14 }
  0x2f   :  { %740 = vmatpush.bf16.msra.mxu2 %v1552_v38  ;;  %v1457_v18 = vld [vmem:[#allocation2 + $0x48] sm:$0xf0]  ;;  %v1775_v21 = vld [vmem:[#allocation2 + $0x2c0] sm:$0xf]  ;;  %v2128_v22 = vld [vmem:[#allocation2 + $0x2c4] sm:$0xf0]  ;;  %v1712_v24 = vor.u32 %v2112_v16, %v1711_v15 }
  0x30   :  { %753 = vmatpush.bf16.msra.mxu3 %v1616_v39  ;;  %v84_v23 = vld [vmem:[%s2464_s0 + $0x18] sm:$0xf]  ;;  %v1460_v25 = vor.u32 %v2047_v17, %v1457_v18  ;;  %v2063_v26 = vld [vmem:[#allocation2 + $0xc4] sm:$0xf]  ;;  %v1521_v27 = vld [vmem:[#allocation2 + $0xc8] sm:$0xf0]  ;;  %v1776_v32 = vor.u32 %v2128_v22, %v1775_v21 }
  0x31   :  { %727 = vmatpush.bf16.msra.mxu1 %v1488_v48  ;;  %715 = vmatmul.bf16.vlgmr.msra.gmra.mxu0 %v2384_v58  ;;  %v1703_v28 = vld [vmem:[#allocation2 + $0x230] sm:$0xf]  ;;  %v2110_v29 = vld [vmem:[#allocation2 + $0x234] sm:$0xf0]  ;;  %v2045_v30 = vld [vmem:[#allocation2 + $0x34] sm:$0xf]  ;;  %v199_v33 = vunpack.c.l.b16 %v84_v23  ;;  %v1524_v34 = vor.u32 %v2063_v26, %v1521_v27 }
  0x32   :  { %759 = vmatpush.bf16.msrb.mxu0 %v1736_v43  ;;  %741 = vmatmul.bf16.vlgmr.msra.gmra.mxu2 %v2382_v55  ;;  %v1449_v31 = vld [vmem:[#allocation2 + $0x38] sm:$0xf0]  ;;  %v1767_v35 = vld [vmem:[#allocation2 + $0x2b0] sm:$0xf]  ;;  %v2126_v36 = vld [vmem:[#allocation2 + $0x2b4] sm:$0xf0]  ;;  %v1704_v37 = vor.u32 %v2110_v29, %v1703_v28 }
  0x33   :  { %792 = vmatpush.bf16.msrb.mxu2 %v1808_v49  ;;  %754 = vmatmul.bf16.vlgmr.msra.gmra.mxu3 %v2386_v2  ;;  %v1452_v38 = vor.u32 %v2045_v30, %v1449_v31  ;;  %v2061_v39 = vld [vmem:[#allocation2 + $0xb4] sm:$0xf]  ;;  %v1513_v40 = vld [vmem:[#allocation2 + $0xb8] sm:$0xf0]  ;;  %v1695_v41 = vld [vmem:[#allocation2 + $0x220] sm:$0xf]  ;;  %v1768_v45 = vor.u32 %v2126_v36, %v1767_v35  ;;  %v2397_v46 = vpack.c.b16 %v199_v33, %v199_v33 }
  0x34   :  { %798 = vmatpush.bf16.msrb.mxu3 %v1484_v44  ;;  %728 = vmatmul.bf16.vlgmr.msra.gmra.mxu1 %v2388_v3  ;;  %v2108_v42 = vld [vmem:[#allocation2 + $0x224] sm:$0xf0]  ;;  %v2043_v43 = vld [vmem:[#allocation2 + $0x24] sm:$0xf]  ;;  %v1441_v44 = vld [vmem:[#allocation2 + $0x28] sm:$0xf0]  ;;  %v1516_v47 = vor.u32 %v2061_v39, %v1513_v40 }
  0x35   :  { %772 = vmatpush.bf16.msrb.mxu1 %v1800_v56  ;;  %v1759_v48 = vld [vmem:[#allocation2 + $0x2a0] sm:$0xf]  ;;  %v2124_v49 = vld [vmem:[#allocation2 + $0x2a4] sm:$0xf0]  ;;  %v1696_v50 = vor.u32 %v2108_v42, %v1695_v41  ;;  %v1444_v51 = vor.u32 %v2043_v43, %v1441_v44  ;;  %v2059_v52 = vld [vmem:[#allocation2 + $0xa4] sm:$0xf] }
  0x36   :  { %760 = vmatpush.bf16.msrb.mxu0 %v1728_v61  ;;  %v1505_v53 = vld [vmem:[#allocation2 + $0xa8] sm:$0xf0]  ;;  %v1687_v54 = vld [vmem:[#allocation2 + $0x210] sm:$0xf]  ;;  %v2106_v56 = vld [vmem:[#allocation2 + $0x214] sm:$0xf0]  ;;  %v1760_v60 = vor.u32 %v2124_v49, %v1759_v48 }
  0x37   :  { %811 = vmatpush.bf16.msra.mxu2 %v1548_v57  ;;  %v2041_v57 = vld [vmem:[#allocation2 + $0x14] sm:$0xf]  ;;  %v1433_v59 = vld [vmem:[#allocation2 + $0x18] sm:$0xf0]  ;;  %v1751_v61 = vld [vmem:[#allocation2 + $0x290] sm:$0xf]  ;;  %v1688_v4 = vor.u32 %v2106_v56, %v1687_v54 }
  0x38   :  { %799 = vmatpush.bf16.msrb.mxu3 %v1476_v62  ;;  %v1508_v62 = vor.u32 %v2059_v52, %v1505_v53  ;;  %v2122_v63 = vld [vmem:[#allocation2 + $0x294] sm:$0xf0]  ;;  %v2057_v0 = vld [vmem:[#allocation2 + $0x94] sm:$0xf]  ;;  %v1497_v1 = vld [vmem:[#allocation2 + $0x98] sm:$0xf0]  ;;  %v1436_v5 = vor.u32 %v2041_v57, %v1433_v59 }
  0x39   :  { %773 = vmatpush.bf16.msrb.mxu1 %v1792_v7  ;;  %v1679_v6 = vld [vmem:[#allocation2 + $0x200] sm:$0xf]  ;;  %v2104_v7 = vld [vmem:[#allocation2 + $0x204] sm:$0xf0]  ;;  %v2039_v9 = vld [vmem:[#allocation2 + $0x4] sm:$0xf]  ;;  %v1500_v16 = vor.u32 %v2057_v0, %v1497_v1 }
  0x3a   :  { %761 = vmatpush.bf16.msrb.mxu0 %v1720_v11  ;;  %v1425_v10 = vld [vmem:[#allocation2 + $0x8] sm:$0xf0]  ;;  %v2085_v11 = vld [vmem:[#allocation2 + $0x174] sm:$0xf]  ;;  %v1609_v13 = vld [vmem:[#allocation2 + $0x178] sm:$0xf0] }
  0x3b   :  { %812 = vmatpush.bf16.msra.mxu2 %v1540_v8  ;;  %v83_v8 = vld [vmem:[%s2464_s0 + $0x10] sm:$0xff]  ;;  %v1737_v15 = vld [vmem:[#allocation2 + $0x278] sm:$0xf0]  ;;  %v1743_v17 = vld [vmem:[#allocation2 + $0x280] sm:$0xf]  ;;  %v1428_v21 = vor.u32 %v2039_v9, %v1425_v10  ;;  %s1410_s10 = sshll.u32 %s2473_s9, 4  ;;  %s1411_s10 = int_to_ptr.hbm [resolvable:$true] %s1410_s10 }
  0x3c   :  { %800 = vmatpush.bf16.msrb.mxu3 %v1468_v12  ;;  %v1752_v12 = vor.u32 %v2122_v63, %v1751_v61  ;;  %v2117_v14 = vld [vmem:[#allocation2 + $0x274] sm:$0xf]  ;;  %v2120_v18 = vld [vmem:[#allocation2 + $0x284] sm:$0xf0]  ;;  %v2055_v22 = vld [vmem:[#allocation2 + $0x84] sm:$0xf]  ;;  %v198_v30 = vunpack.c.h.b16 %v83_v8 }
  0x3d   :  { %774 = vmatpush.bf16.msrb.mxu1 %v1784_v19  ;;  %v197_v19 = vunpack.c.l.b16 %v83_v8  ;;  %v1489_v23 = vld [vmem:[#allocation2 + $0x88] sm:$0xf0]  ;;  %v1740_v26 = vor.u32 %v2117_v14, %v1737_v15  ;;  %v1673_v27 = vld [vmem:[#allocation2 + $0x1f8] sm:$0xf0]  ;;  %v2133_v28 = vld [vmem:[#allocation2 + $0x2f4] sm:$0xf]  ;;  %v1744_v31 = vor.u32 %v2120_v18, %v1743_v17 }
  0x3e   :  { %762 = vmatpush.bf16.msrb.mxu0 %v1712_v24  ;;  %v2101_v24 = vld [vmem:[#allocation2 + $0x1f4] sm:$0xf]  ;;  %v1801_v29 = vld [vmem:[#allocation2 + $0x2f8] sm:$0xf0]  ;;  %v1601_v33 = vld [vmem:[#allocation2 + $0x168] sm:$0xf0]  ;;  %v1492_v35 = vor.u32 %v2055_v22, %v1489_v23  ;;  %v2406_v41 = vpack.c.b16 %v198_v30, %v198_v30 }
  0x3f   :  { %813 = vmatpush.bf16.msra.mxu2 %v1532_v20  ;;  %v1680_v20 = vor.u32 %v2104_v7, %v1679_v6  ;;  %v2115_v36 = vld [vmem:[#allocation2 + $0x264] sm:$0xf]  ;;  %v1804_v39 = vor.u32 %v2133_v28, %v1801_v29  ;;  %v1665_v43 = vld [vmem:[#allocation2 + $0x1e8] sm:$0xf0]  ;;  %v2081_v48 = vld [vmem:[#allocation2 + $0x154] sm:$0xf] }
  0x40   :  { %801 = vmatpush.bf16.msrb.mxu3 %v1460_v25  ;;  %v1612_v25 = vor.u32 %v2085_v11, %v1609_v13  ;;  %v2099_v40 = vld [vmem:[#allocation2 + $0x1e4] sm:$0xf]  ;;  %v1593_v49 = vld [vmem:[#allocation2 + $0x158] sm:$0xf0]  ;;  %v2097_v54 = vld [vmem:[#allocation2 + $0x1d4] sm:$0xf] }
  0x41   :  { %775 = vmatpush.bf16.msrb.mxu1 %v1776_v32  ;;  %v2083_v32 = vld [vmem:[#allocation2 + $0x164] sm:$0xf]  ;;  %v1668_v52 = vor.u32 %v2099_v40, %v1665_v43  ;;  %v1657_v56 = vld [vmem:[#allocation2 + $0x1d8] sm:$0xf0]  ;;  %v1596_v57 = vor.u32 %v2081_v48, %v1593_v49  ;;  %v2129_v59 = vld [vmem:[#allocation2 + $0x2d4] sm:$0xf] }
  0x42   :  { %763 = vmatpush.bf16.msrb.mxu0 %v1704_v37  ;;  %1813 = vmatmul.msk.bf16.vlgmr.msrb.gmra.mxu2 %vm703_vm0, %v2397_v46  ;;  %v1729_v37 = vld [vmem:[#allocation2 + $0x268] sm:$0xf0]  ;;  %v1604_v42 = vor.u32 %v2083_v32, %v1601_v33  ;;  %v2131_v44 = vld [vmem:[#allocation2 + $0x2e4] sm:$0xf]  ;;  %v2109_v13 = vld [vmem:[#allocation2 + $0x234] sm:$0xf] }
  0x43   :  { %814 = vmatpush.bf16.msra.mxu2 %v1524_v34  ;;  %v2404_v34 = vpack.c.b16 %v197_v19, %v197_v19  ;;  %v1585_v63 = vld [vmem:[#allocation2 + $0x148] sm:$0xf0]  ;;  %v2111_v0 = vld [vmem:[#allocation2 + $0x244] sm:$0xf]  ;;  %v1705_v14 = vld [vmem:[#allocation2 + $0x238] sm:$0xf0] }
  0x44   :  { %802 = vmatpush.bf16.msrb.mxu3 %v1452_v38  ;;  %v1676_v38 = vor.u32 %v2101_v24, %v1673_v27  ;;  %v1713_v1 = vld [vmem:[#allocation2 + $0x248] sm:$0xf0]  ;;  %v2095_v6 = vld [vmem:[#allocation2 + $0x1c4] sm:$0xf]  ;;  %v1641_v18 = vld [vmem:[#allocation2 + $0x1b8] sm:$0xf0] }
  0x45   :  { %776 = vmatpush.bf16.msrb.mxu1 %v1768_v45  ;;  %v1793_v45 = vld [vmem:[#allocation2 + $0x2e8] sm:$0xf0]  ;;  %v2127_v9 = vld [vmem:[#allocation2 + $0x2c4] sm:$0xf]  ;;  %v1716_v11 = vor.u32 %v2111_v0, %v1713_v1  ;;  %v2125_v19 = vld [vmem:[#allocation2 + $0x2b4] sm:$0xf] }
  0x46   :  { %764 = vmatpush.bf16.msrb.mxu0 %v1696_v50  ;;  %v2113_v50 = vld [vmem:[#allocation2 + $0x254] sm:$0xf]  ;;  %v1796_v53 = vor.u32 %v2131_v44, %v1793_v45  ;;  %v1649_v8 = vld [vmem:[#allocation2 + $0x1c8] sm:$0xf0]  ;;  %v2075_v22 = vld [vmem:[#allocation2 + $0x124] sm:$0xf] }
  0x47   :  { %815 = vmatpush.bf16.msra.mxu2 %v1516_v47  ;;  %v1732_v47 = vor.u32 %v2115_v36, %v1729_v37  ;;  %v1777_v10 = vld [vmem:[#allocation2 + $0x2c8] sm:$0xf0]  ;;  %v1652_v15 = vor.u32 %v2095_v6, %v1649_v8  ;;  %v2107_v24 = vld [vmem:[#allocation2 + $0x224] sm:$0xf]  ;;  %v1561_v36 = vld [vmem:[#allocation2 + $0x118] sm:$0xf0] }
  0x48   :  { %803 = vmatpush.bf16.msrb.mxu3 %v1444_v51  ;;  %v1721_v51 = vld [vmem:[#allocation2 + $0x258] sm:$0xf0]  ;;  %v1569_v23 = vld [vmem:[#allocation2 + $0x128] sm:$0xf0]  ;;  %v2091_v28 = vld [vmem:[#allocation2 + $0x1a4] sm:$0xf] }
  0x49   :  { %777 = vmatpush.bf16.msrb.mxu1 %v1760_v60  ;;  %v1785_v60 = vld [vmem:[#allocation2 + $0x2d8] sm:$0xf0]  ;;  %v1724_v61 = vor.u32 %v2113_v50, %v1721_v51  ;;  %v1572_v29 = vor.u32 %v2075_v22, %v1569_v23  ;;  %v1633_v30 = vld [vmem:[#allocation2 + $0x1a8] sm:$0xf0]  ;;  %v2105_v37 = vld [vmem:[#allocation2 + $0x214] sm:$0xf] }
  0x4a   :  { %765 = vmatpush.bf16.msrb.mxu0 %v1688_v4  ;;  %v1660_v4 = vor.u32 %v2097_v54, %v1657_v56  ;;  %v1761_v32 = vld [vmem:[#allocation2 + $0x2a8] sm:$0xf0]  ;;  %v1625_v44 = vld [vmem:[#allocation2 + $0x198] sm:$0xf0]  ;;  %v2121_v45 = vld [vmem:[#allocation2 + $0x294] sm:$0xf] }
  0x4b   :  { %816 = vmatpush.bf16.msra.mxu2 %v1508_v62  ;;  %v2079_v62 = vld [vmem:[#allocation2 + $0x144] sm:$0xf]  ;;  %v1553_v50 = vld [vmem:[#allocation2 + $0x108] sm:$0xf0]  ;;  %v1873_v6 = vld [vmem:[#allocation5 + $0x70] sm:$0xf] }
  0x4c   :  { %804 = vmatpush.bf16.msrb.mxu3 %v1436_v5  ;;  %v1788_v5 = vor.u32 %v2129_v59, %v1785_v60  ;;  %v1588_v7 = vor.u32 %v2079_v62, %v1585_v63  ;;  %v2071_v49 = vld [vmem:[#allocation2 + $0x104] sm:$0xf]  ;;  %v1617_v59 = vld [vmem:[#allocation2 + $0x188] sm:$0xf0]  ;;  %v1841_v23 = vld [vmem:[#allocation5 + $0x30] sm:$0xf] }
  0x4d   :  { %778 = vmatpush.bf16.msrb.mxu1 %v1752_v12  ;;  %v2077_v12 = vld [vmem:[#allocation2 + $0x134] sm:$0xf]  ;;  %v2103_v51 = vld [vmem:[#allocation2 + $0x204] sm:$0xf]  ;;  %v1556_v56 = vor.u32 %v2071_v49, %v1553_v50  ;;  %v1745_v62 = vld [vmem:[#allocation2 + $0x288] sm:$0xf0] }
  0x4e   :  { %766 = vmatpush.bf16.msrb.mxu0 %v1680_v20  ;;  %v1769_v20 = vld [vmem:[#allocation2 + $0x2b8] sm:$0xf0]  ;;  %v2135_v63 = vld [vmem:[#allocation2 + $0x304] sm:$0xf]  ;;  %v1809_v0 = vld [vmem:[#allocation2 + $0x308] sm:$0xf0] }
  0x4f   :  { %817 = vmatpush.bf16.msra.mxu2 %v1500_v16  ;;  %v2093_v16 = vld [vmem:[#allocation2 + $0x1b4] sm:$0xf]  ;;  %v1772_v27 = vor.u32 %v2125_v19, %v1769_v20  ;;  %v2151_v8 = vld [vmem:[#allocation5 + $0x74] sm:$0xf]  ;;  %v1851_v20 = vld [vmem:[#allocation5 + $0x48] sm:$0xf0] }
  0x50   :  { %805 = vmatpush.bf16.msrb.mxu3 %v1428_v21  ;;  %v1708_v21 = vor.u32 %v2109_v13, %v1705_v14  ;;  %v1867_v13 = vld [vmem:[#allocation5 + $0x68] sm:$0xf0]  ;;  %v2145_v19 = vld [vmem:[#allocation5 + $0x44] sm:$0xf] }
  0x51   :  { %779 = vmatpush.bf16.msrb.mxu1 %v1744_v31  ;;  %767 = vmatmul.bf16.vlgmr.msrb.gmra.mxu0 %v2404_v34  ;;  %v2123_v31 = vld [vmem:[#allocation2 + $0x2a4] sm:$0xf]  ;;  %v1854_v22 = vor.u32 %v2145_v19, %v1851_v20  ;;  %v1819_v50 = vld [vmem:[#allocation5 + $0x8] sm:$0xf0]  ;;  %v1923_v20 = vld [vmem:[#allocation5 + $0xd8] sm:$0xf0] }
  0x52   :  { %824 = vmatpush.bf16.msra.mxu0 %v1612_v25  ;;  %v1697_v25 = vld [vmem:[#allocation2 + $0x228] sm:$0xf0]  ;;  %v1764_v40 = vor.u32 %v2123_v31, %v1761_v32  ;;  %v2141_v31 = vld [vmem:[#allocation5 + $0x24] sm:$0xf] }
  0x53   :  { %818 = vmatpush.bf16.msra.mxu2 %v1492_v35  ;;  %806 = vmatmul.bf16.vlgmr.msrb.gmra.mxu3 %v2384_v58  ;;  %v1780_v58 = vor.u32 %v2127_v9, %v1777_v10  ;;  %v1700_v33 = vor.u32 %v2107_v24, %v1697_v25  ;;  %v2073_v35 = vld [vmem:[#allocation2 + $0x114] sm:$0xf]  ;;  %v1875_v10 = vld [vmem:[#allocation5 + $0x78] sm:$0xf0]  ;;  %v2144_v24 = vld [vmem:[#allocation5 + $0x34] sm:$0xf0] }
  0x54   :  { %850 = vmatpush.bf16.msra.mxu3 %v1740_v26  ;;  %780 = vmatmul.bf16.vlgmr.msrb.gmra.mxu1 %v2406_v41  ;;  %v1644_v26 = vor.u32 %v2093_v16, %v1641_v18  ;;  %v1564_v43 = vor.u32 %v2073_v35, %v1561_v36  ;;  %v1849_v16 = vld [vmem:[#allocation5 + $0x40] sm:$0xf]  ;;  %v2143_v25 = vld [vmem:[#allocation5 + $0x34] sm:$0xf]  ;;  %v1825_v36 = vld [vmem:[#allocation5 + $0x10] sm:$0xf] }
  0x55   :  { %837 = vmatpush.bf16.msra.mxu1 %v1676_v38  ;;  %v1689_v38 = vld [vmem:[#allocation2 + $0x218] sm:$0xf0] }
  0x56   :  { %825 = vmatpush.bf16.msra.mxu0 %v1604_v42  ;;  %819 = vmatmul.bf16.vlgmr.msra.gmra.mxu2 %v2388_v3  ;;  %v1577_v3 = vld [vmem:[#allocation2 + $0x138] sm:$0xf0]  ;;  %v2089_v42 = vld [vmem:[#allocation2 + $0x194] sm:$0xf]  ;;  %v1692_v48 = vor.u32 %v2105_v37, %v1689_v38  ;;  %v2140_v37 = vld [vmem:[#allocation5 + $0x14] sm:$0xf0] }
  0x57   :  { %863 = vmatpush.bf16.msrb.mxu2 %v1804_v39  ;;  %v1580_v17 = vor.u32 %v2077_v12, %v1577_v3  ;;  %v1636_v39 = vor.u32 %v2091_v28, %v1633_v30  ;;  %v1865_v12 = vld [vmem:[#allocation5 + $0x60] sm:$0xf]  ;;  %v2149_v3 = vld [vmem:[#allocation5 + $0x64] sm:$0xf]  ;;  %v2142_v30 = vld [vmem:[#allocation5 + $0x24] sm:$0xf0] }
  0x58   :  { %851 = vmatpush.bf16.msra.mxu3 %v1732_v47  ;;  %v1753_v47 = vld [vmem:[#allocation2 + $0x298] sm:$0xf0]  ;;  %v1870_v14 = vor.u32 %v2149_v3, %v1867_v13  ;;  %v2139_v38 = vld [vmem:[#allocation5 + $0x14] sm:$0xf]  ;;  %v2165_v3 = vld [vmem:[#allocation5 + $0xe4] sm:$0xf] }
  0x59   :  { %838 = vmatpush.bf16.msra.mxu1 %v1668_v52  ;;  %v1681_v52 = vld [vmem:[#allocation2 + $0x208] sm:$0xf0]  ;;  %v1756_v54 = vor.u32 %v2121_v45, %v1753_v47  ;;  %v1817_v45 = vld [vmem:[#allocation5] sm:$0xf]  ;;  %v2138_v47 = vld [vmem:[#allocation5 + $0x4] sm:$0xf0] }
  0x5a   :  { %826 = vmatpush.bf16.msra.mxu0 %v1596_v57  ;;  %v2087_v57 = vld [vmem:[#allocation2 + $0x184] sm:$0xf]  ;;  %v1684_v60 = vor.u32 %v2103_v51, %v1681_v52  ;;  %v1818_v49 = vor.u32 %v2138_v47, %v1817_v45  ;;  %v1899_v47 = vld [vmem:[#allocation5 + $0xa8] sm:$0xf0] }
  0x5b   :  { %864 = vmatpush.bf16.msrb.mxu2 %v1796_v53  ;;  %v1628_v53 = vor.u32 %v2089_v42, %v1625_v44  ;;  %v1620_v1 = vor.u32 %v2087_v57, %v1617_v59 }
  0x5c   :  { %852 = vmatpush.bf16.msra.mxu3 %v1724_v61  ;;  %v2119_v61 = vld [vmem:[#allocation2 + $0x284] sm:$0xf] }
  0x5d   :  { %839 = vmatpush.bf16.msra.mxu1 %v1660_v4  ;;  %v1748_v4 = vor.u32 %v2119_v61, %v1745_v62 }
  0x5e   :  { %827 = vmatpush.bf16.msra.mxu0 %v1588_v7  ;;  %v2152_v7 = vld [vmem:[#allocation5 + $0x74] sm:$0xf0] }
  0x5f   :  { %865 = vmatpush.bf16.msrb.mxu2 %v1788_v5  ;;  %v1812_v5 = vor.u32 %v2135_v63, %v1809_v0  ;;  %v1874_v9 = vor.u32 %v2152_v7, %v1873_v6  ;;  %v2167_v6 = vld [vmem:[#allocation5 + $0xf4] sm:$0xf] }
  0x60   :  { %853 = vmatpush.bf16.msra.mxu3 %v1716_v11  ;;  %v1878_v11 = vor.u32 %v2151_v8, %v1875_v10  ;;  %v1939_v8 = vld [vmem:[#allocation5 + $0xf8] sm:$0xf0] }
  0x61   :  { %840 = vmatpush.bf16.msra.mxu1 %v1652_v15  ;;  %v2147_v15 = vld [vmem:[#allocation5 + $0x54] sm:$0xf] }
  0x62   :  { %828 = vmatpush.bf16.msra.mxu0 %v1580_v17  ;;  %v2146_v17 = vld [vmem:[#allocation5 + $0x44] sm:$0xf0] }
  0x63   :  { %866 = vmatpush.bf16.msrb.mxu2 %v1780_v58  ;;  %v1859_v58 = vld [vmem:[#allocation5 + $0x58] sm:$0xf0] }
  0x64   :  { %854 = vmatpush.bf16.msra.mxu3 %v1708_v21  ;;  %v1862_v18 = vor.u32 %v2147_v15, %v1859_v58  ;;  %v1850_v21 = vor.u32 %v2146_v17, %v1849_v16  ;;  %v1921_v58 = vld [vmem:[#allocation5 + $0xd0] sm:$0xf]  ;;  %v2164_v16 = vld [vmem:[#allocation5 + $0xd4] sm:$0xf0]  ;;  %v2163_v17 = vld [vmem:[#allocation5 + $0xd4] sm:$0xf] }
  0x65   :  { %841 = vmatpush.bf16.msra.mxu1 %v1644_v26  ;;  %v1843_v26 = vld [vmem:[#allocation5 + $0x38] sm:$0xf0]  ;;  %v1922_v19 = vor.u32 %v2164_v16, %v1921_v58 }
  0x66   :  { %829 = vmatpush.bf16.msra.mxu0 %v1572_v29  ;;  %v1846_v28 = vor.u32 %v2143_v25, %v1843_v26  ;;  %v1833_v29 = vld [vmem:[#allocation5 + $0x20] sm:$0xf]  ;;  %v2162_v25 = vld [vmem:[#allocation5 + $0xc4] sm:$0xf0]  ;;  %v2161_v26 = vld [vmem:[#allocation5 + $0xc4] sm:$0xf] }
  0x67   :  { %867 = vmatpush.bf16.msrb.mxu2 %v1772_v27  ;;  %v1842_v27 = vor.u32 %v2144_v24, %v1841_v23  ;;  %v1834_v32 = vor.u32 %v2142_v30, %v1833_v29  ;;  %v1913_v24 = vld [vmem:[#allocation5 + $0xc0] sm:$0xf]  ;;  %v1915_v30 = vld [vmem:[#allocation5 + $0xc8] sm:$0xf0] }
  0x68   :  { %855 = vmatpush.bf16.msra.mxu3 %v1700_v33  ;;  %v1835_v33 = vld [vmem:[#allocation5 + $0x28] sm:$0xf0]  ;;  %v1914_v29 = vor.u32 %v2162_v25, %v1913_v24  ;;  %v2172_v24 = vld [vmem:[#allocation7 + $0x18] sm:$0xff] }
  0x69   :  { %842 = vmatpush.bf16.msra.mxu1 %v1636_v39  ;;  %v1838_v35 = vor.u32 %v2141_v31, %v1835_v33  ;;  %v1826_v39 = vor.u32 %v2140_v37, %v1825_v36  ;;  %v1918_v33 = vor.u32 %v2161_v26, %v1915_v30  ;;  %v2160_v36 = vld [vmem:[#allocation5 + $0xb4] sm:$0xf0]  ;;  %v2159_v37 = vld [vmem:[#allocation5 + $0xb4] sm:$0xf] }
  0x6a   :  { %830 = vmatpush.bf16.msra.mxu0 %v1564_v43  ;;  %v2180_v25 = vld [vmem:[#allocation7 + $0x58] sm:$0xff]  ;;  %v2171_v26 = vld [vmem:[#allocation7 + $0x10] sm:$0xff] }
  0x6b   :  { %868 = vmatpush.bf16.msrb.mxu2 %v1764_v40  ;;  %v1827_v40 = vld [vmem:[#allocation5 + $0x18] sm:$0xf0] }
  0x6c   :  { %856 = vmatpush.bf16.msra.mxu3 %v1692_v48  ;;  %v1830_v43 = vor.u32 %v2139_v38, %v1827_v40  ;;  %v2137_v48 = vld [vmem:[#allocation5 + $0x4] sm:$0xf] }
  0x6d   :  { %843 = vmatpush.bf16.msra.mxu1 %v1628_v53  ;;  %v1822_v51 = vor.u32 %v2137_v48, %v1819_v50  ;;  %v2421_v53 = vld [vmem:[%s2466_s2] sm:$0x3] }
  0x6e   :  { %831 = vmatpush.bf16.msra.mxu0 %v1556_v56  ;;  %v185_v59 = vperm.slane %v2421_v53, 0 }
  0x6f   :  { %869 = vmatpush.bf16.msrb.mxu2 %v1756_v54 }
  0x70   :  { %857 = vmatpush.bf16.msra.mxu3 %v1684_v60 }
  0x71   :  { %844 = vmatpush.bf16.msra.mxu1 %v1620_v1  ;;  %832 = vmatmul.bf16.vlgmr.msra.gmra.mxu0 %v2382_v55  ;;  %v2150_v55 = vld [vmem:[#allocation5 + $0x64] sm:$0xf0] }
  0x72   :  { %1117 = vmatpush.bf16.msrb.mxu0 %v1878_v11 }
  0x73   :  { %858 = vmatmul.bf16.vlgmr.msra.gmra.mxu3 %v2404_v34  ;;  %870 = vmatpush.bf16.msrb.mxu2 %v1748_v4  ;;  %v1866_v34 = vor.u32 %v2150_v55, %v1865_v12  ;;  %v1937_v4 = vld [vmem:[#allocation5 + $0xf0] sm:$0xf]  ;;  %v1929_v12 = vld [vmem:[#allocation5 + $0xe0] sm:$0xf]  ;;  %v2166_v55 = vld [vmem:[#allocation5 + $0xe4] sm:$0xf0] }
  0x74   :  { %845 = vmatmul.bf16.vlgmr.msra.gmra.mxu1 %v2386_v2  ;;  %v1857_v2 = vld [vmem:[#allocation5 + $0x50] sm:$0xf] }
  0x75   :  { %1091 = vmatpush.bf16.msrb.mxu1 %v1874_v9  ;;  %v1942_v9 = vor.u32 %v2167_v6, %v1939_v8  ;;  %v186_v6 = vperm.slane %v2421_v53, 1  ;;  %v2176_v53 = vld [vmem:[#allocation7 + $0x38] sm:$0xff] }
  0x76   :  { %871 = vmatmul.bf16.vlgmr.msrb.gmra.mxu2 %v2406_v41  ;;  %v2148_v41 = vld [vmem:[#allocation5 + $0x54] sm:$0xf0]  ;;  %1118 = vmatpush.bf16.msrb.mxu0 %v1870_v14  ;;  %v1930_v14 = vor.u32 %v2166_v55, %v1929_v12 }
  0x77   :  { %883 = vmatpush.bf16.msra.mxu2 %v1812_v5  ;;  %v2168_v5 = vld [vmem:[#allocation5 + $0xf4] sm:$0xf0] }
  0x78   :  { %v1938_v7 = vor.u32 %v2168_v5, %v1937_v4 }
  0x79   :  { %1092 = vmatpush.bf16.msrb.mxu1 %v1866_v34 }
  0x7a   :  { %1119 = vmatpush.bf16.msrb.mxu0 %v1862_v18  ;;  %1104 = vmatpush.bf16.msrb.mxu3 %v1938_v7 }
  0x7b   :  { %1130 = vmatpush.bf16.msrb.mxu2 %v1942_v9 }
  0x7e   :  { %1120 = vmatpush.bf16.msrb.mxu0 %v1854_v22  ;;  %1105 = vmatpush.bf16.msrb.mxu3 %v1930_v14 }
  0x82   :  { %1121 = vmatpush.bf16.msrb.mxu0 %v1846_v28  ;;  %1106 = vmatpush.bf16.msrb.mxu3 %v1922_v19  ;;  %v2183_v19 = vld [vmem:[#allocation7 + $0x70] sm:$0xff] }
  0x86   :  { %1814 = vmatmul.msk.bf16.vlgmr.msra.gmra.mxu2 %vm703_vm0, %v2397_v46  ;;  %v1858_v46 = vor.u32 %v2148_v41, %v1857_v2  ;;  %1122 = vmatpush.bf16.msrb.mxu0 %v1838_v35  ;;  %v1931_v2 = vld [vmem:[#allocation5 + $0xe8] sm:$0xf0]  ;;  %v1905_v35 = vld [vmem:[#allocation5 + $0xb0] sm:$0xf] }
  0x87   :  { %v1934_v15 = vor.u32 %v2165_v3, %v1931_v2  ;;  %1107 = vmatpush.bf16.msrb.mxu3 %v1914_v29  ;;  %v1906_v38 = vor.u32 %v2160_v36, %v1905_v35  ;;  %v2169_v35 = vld [vmem:[#allocation7] sm:$0xff] }
  0x88   :  { %1093 = vmatpush.bf16.msrb.mxu1 %v1858_v46  ;;  %v2177_v36 = vld [vmem:[#allocation7 + $0x40] sm:$0xff] }
  0x89   :  { %1131 = vmatpush.bf16.msrb.mxu2 %v1934_v15 }
  0x8a   :  { %1123 = vmatpush.bf16.msrb.mxu0 %v1830_v43  ;;  %v2158_v43 = vld [vmem:[#allocation5 + $0xa4] sm:$0xf0] }
  0x8b   :  { %1108 = vmatpush.bf16.msrb.mxu3 %v1906_v38  ;;  %v2191_v38 = vld [vmem:[%s2471_s7 + $0x30] sm:$0xff] }
  0x8c   :  { %1094 = vmatpush.bf16.msrb.mxu1 %v1850_v21  ;;  %v1926_v21 = vor.u32 %v2163_v17, %v1923_v20  ;;  %v2184_v17 = vld [vmem:[#allocation7 + $0x78] sm:$0xff]  ;;  %v2174_v20 = vld [vmem:[#allocation7 + $0x28] sm:$0xff] }
  0x8e   :  { %1124 = vmatpush.bf16.msrb.mxu0 %v1822_v51  ;;  %1132 = vmatpush.bf16.msrb.mxu2 %v1926_v21  ;;  %v1889_v51 = vld [vmem:[#allocation5 + $0x90] sm:$0xf]  ;;  %v2182_v21 = vld [vmem:[#allocation7 + $0x68] sm:$0xff] }
  0x90   :  { %1095 = vmatpush.bf16.msrb.mxu1 %v1842_v27 }
  0x92   :  { %1133 = vmatpush.bf16.msrb.mxu2 %v1918_v33  ;;  %v2178_v33 = vld [vmem:[#allocation7 + $0x48] sm:$0xff] }
  0x94   :  { %1096 = vmatpush.bf16.msrb.mxu1 %v1834_v32 }
  0x98   :  { %1097 = vmatpush.bf16.msrb.mxu1 %v1826_v39  ;;  %v1907_v39 = vld [vmem:[#allocation5 + $0xb8] sm:$0xf0] }
  0x99   :  { %v1910_v40 = vor.u32 %v2159_v37, %v1907_v39  ;;  %v2192_v37 = vld [vmem:[%s2471_s7 + $0x38] sm:$0xff]  ;;  %v2190_v39 = vld [vmem:[%s2471_s7 + $0x28] sm:$0xff] }
  0x9a   :  { %1375 = vmatpush.bf16.msra.mxu0 %v2192_v37 }
  0x9b   :  { %1134 = vmatpush.bf16.msrb.mxu2 %v1910_v40  ;;  %v2189_v40 = vld [vmem:[%s2471_s7 + $0x20] sm:$0xff] }
  0x9c   :  { %1098 = vmatpush.bf16.msrb.mxu1 %v1818_v49 }
  0x9e   :  { %1376 = vmatpush.bf16.msra.mxu0 %v2191_v38 }
  0xa0   :  { %1279 = vmatpush.bf16.msra.mxu1 %v2176_v53 }
  0xa2   :  { %1377 = vmatpush.bf16.msra.mxu0 %v2190_v39 }
  0xa6   :  { %1378 = vmatpush.bf16.msra.mxu0 %v2189_v40 }
  0xae   :  { %v716_v42 = vpop.f32.mrf.mxu0 }
  0xaf   :  { %v717_v61 = vadd.f32 %v716_v42, %v185_v59  ;;  %v1897_v42 = vld [vmem:[#allocation5 + $0xa0] sm:$0xf] }
  0xb0   :  { %v1898_v45 = vor.u32 %v2158_v43, %v1897_v42  ;;  %v2188_v42 = vld [vmem:[%s2471_s7 + $0x18] sm:$0xff]  ;;  %v925_v43 = vld [vmem:[%s2468_s4] sm:$0x3] }
  0xb1   :  { %v729_v44 = vpop.f32.mrf.mxu1  ;;  %1379 = vmatpush.bf16.msra.mxu0 %v2188_v42 }
  0xb2   :  { %v730_v63 = vadd.f32 %v729_v44, %v717_v61  ;;  %v2157_v44 = vld [vmem:[#allocation5 + $0xa4] sm:$0xf]  ;;  %1109 = vmatpush.bf16.msrb.mxu3 %v1898_v45  ;;  %v2154_v61 = vld [vmem:[#allocation5 + $0x84] sm:$0xf0]  ;;  %v928_v45 = vperm.slane %v925_v43, 1 }
  0xb3   :  { %v1902_v49 = vor.u32 %v2157_v44, %v1899_v47  ;;  %v927_v44 = vperm.slane %v925_v43, 0 }
  0xb5   :  { %v742_v52 = vpop.f32.mrf.mxu2  ;;  %1135 = vmatpush.bf16.msrb.mxu2 %v1902_v49 }
  0xb6   :  { %v755_v54 = vpop.f32.mrf.mxu3  ;;  %v718_v56 = vpop.f32.mrf.mxu0  ;;  %v743_v1 = vadd.f32 %v742_v52, %v730_v63  ;;  %v2156_v52 = vld [vmem:[#allocation5 + $0x94] sm:$0xf0] }
  0xb7   :  { %v1890_v56 = vor.u32 %v2156_v52, %v1889_v51 }
  0xb8   :  { %v756_v10 = vadd.f32 %v755_v54, %v743_v1  ;;  %v2155_v54 = vld [vmem:[#allocation5 + $0x94] sm:$0xf] }
  0xb9   :  { %v731_v57 = vpop.f32.mrf.mxu1  ;;  %1110 = vmatpush.bf16.msrb.mxu3 %v1890_v56 }
  0xba   :  { %v1891_v57 = vld [vmem:[#allocation5 + $0x98] sm:$0xf0] }
  0xbb   :  { %v1894_v59 = vor.u32 %v2155_v54, %v1891_v57 }
  0xbd   :  { %v744_v60 = vpop.f32.mrf.mxu2  ;;  %1136 = vmatpush.bf16.msrb.mxu2 %v1894_v59 }
  0xbe   :  { %v757_v62 = vpop.f32.mrf.mxu3  ;;  %v1881_v60 = vld [vmem:[#allocation5 + $0x80] sm:$0xf] }
  0xbf   :  { %v2153_v62 = vld [vmem:[#allocation5 + $0x84] sm:$0xf]  ;;  %v1882_v63 = vor.u32 %v2154_v61, %v1881_v60 }
  0xc1   :  { %1111 = vmatpush.bf16.msrb.mxu3 %v1882_v63  ;;  %v2186_v63 = vld [vmem:[%s2471_s7 + $0x8] sm:$0xff] }
  0xc5   :  { %v794_v0 = vpop.f32.mrf.mxu2  ;;  %1292 = vmatpush.bf16.msra.mxu3 %v2184_v17 }
  0xc9   :  { %1293 = vmatpush.bf16.msra.mxu3 %v2183_v19 }
  0xcd   :  { %v796_v13 = vpop.f32.mrf.mxu2  ;;  %1294 = vmatpush.bf16.msra.mxu3 %v2182_v21 }
  0xce   :  { %v768_v11 = vpop.f32.mrf.mxu0 }
  0xcf   :  { %v769_v34 = vadd.f32 %v768_v11, %v756_v10 }
  0xd1   :  { %v781_v41 = vpop.f32.mrf.mxu1 }
  0xd2   :  { %v782_v46 = vadd.f32 %v781_v41, %v769_v34 }
  0xd4   :  { %v795_v18 = vadd.f32 %v794_v0, %v782_v46  ;;  %v1883_v0 = vld [vmem:[#allocation5 + $0x88] sm:$0xf0] }
  0xd5   :  { %v1886_v1 = vor.u32 %v2153_v62, %v1883_v0  ;;  %v2187_v62 = vld [vmem:[%s2471_s7 + $0x10] sm:$0xff]  ;;  %v2185_v0 = vld [vmem:[%s2471_s7] sm:$0xff] }
  0xd6   :  { %v889_v22 = vmax.f32 %v795_v18, 0.0  ;;  %v770_v23 = vpop.f32.mrf.mxu0  ;;  %v807_v31 = vpop.f32.mrf.mxu3  ;;  %v2175_v18 = vld [vmem:[#allocation7 + $0x30] sm:$0xff]  ;;  %1380 = vmatpush.bf16.msra.mxu0 %v2187_v62 }
  0xd7   :  { %1137 = vmatpush.bf16.msrb.mxu2 %v1886_v1  ;;  %v808_v9 = vadd.f32 %v807_v31, %v186_v6  ;;  %1280 = vmatpush.bf16.msra.mxu1 %v2175_v18  ;;  %v2181_v23 = vld [vmem:[#allocation7 + $0x60] sm:$0xff] }
  0xd8   :  { %v891_v27 = vpack.c.bf16 %v889_v22, %v889_v22  ;;  %v2173_v22 = vld [vmem:[#allocation7 + $0x20] sm:$0xff]  ;;  %1295 = vmatpush.bf16.msra.mxu3 %v2181_v23 }
  0xd9   :  { %v820_v28 = vpop.f32.mrf.mxu2  ;;  %v783_v32 = vpop.f32.mrf.mxu1 }
  0xda   :  { %1099 = vmatmul.bf16.vlgmr.msrb.gmra.mxu1 %v891_v27  ;;  %1125 = vmatmul.bf16.vlgmr.msrb.gmra.mxu0 %v891_v27  ;;  %v821_v12 = vadd.f32 %v820_v28, %v808_v9  ;;  %v2179_v27 = vld [vmem:[#allocation7 + $0x50] sm:$0xff]  ;;  %v2170_v32 = vld [vmem:[#allocation7 + $0x8] sm:$0xff] }
  0xdb   :  { %1281 = vmatpush.bf16.msra.mxu1 %v2174_v20  ;;  %1381 = vmatpush.bf16.msra.mxu0 %v2186_v63 }
  0xdc   :  { %1296 = vmatpush.bf16.msra.mxu3 %v2180_v25 }
  0xde   :  { %v809_v50 = vpop.f32.mrf.mxu3 }
  0xdf   :  { %1282 = vmatpush.bf16.msra.mxu1 %v2173_v22  ;;  %1382 = vmatpush.bf16.msra.mxu0 %v2185_v0 }
  0xe0   :  { %1297 = vmatpush.bf16.msra.mxu3 %v2179_v27 }
  0xe1   :  { %v822_v48 = vpop.f32.mrf.mxu2 }
  0xe3   :  { %1283 = vmatpush.bf16.msra.mxu1 %v2172_v24 }
  0xe4   :  { %1298 = vmatpush.bf16.msra.mxu3 %v2178_v33 }
  0xe7   :  { %1284 = vmatpush.bf16.msra.mxu1 %v2171_v26 }
  0xe8   :  { %1299 = vmatpush.bf16.msra.mxu3 %v2177_v36 }
  0xeb   :  { %1285 = vmatpush.bf16.msra.mxu1 %v2170_v32 }
  0xee   :  { %v833_v4 = vpop.f32.mrf.mxu0 }
  0xef   :  { %v834_v55 = vadd.f32 %v833_v4, %v821_v12  ;;  %1286 = vmatpush.bf16.msra.mxu1 %v2169_v35  ;;  %v2201_v4 = vld [vmem:[%s2470_s6] ss:$0 sm:$0xff]  ;;  %s2316_s6 = smov [#allocation8]  }
  0xf0   :  { %v2202_v12 = vld [vmem:[%s2472_s8] ss:$0 sm:$0xff]  ;;  %s1408_s7 = sshll.u32 %s2316_s6, 4  ;;  %s1409_s7 = int_to_ptr.vmem [resolvable:$true] %s1408_s7 }
  0xf1   :  { %v846_v5 = vpop.f32.mrf.mxu1 }
  0xf2   :  { %v847_v13 = vadd.f32 %v846_v5, %v834_v55 }
  0xf6   :  { %v859_v7 = vpop.f32.mrf.mxu3  ;;  %v835_v8 = vpop.f32.mrf.mxu0 }
  0xf7   :  { %v860_v14 = vadd.f32 %v859_v7, %v847_v13 }
  0xf9   :  { %v872_v10 = vpop.f32.mrf.mxu2  ;;  %v848_v11 = vpop.f32.mrf.mxu1 }
  0xfa   :  { %v873_v2 = vadd.f32 %v872_v10, %v860_v14 }
  0xfe   :  { %v861_v3 = vpop.f32.mrf.mxu3 }
 0x101   :  { %v874_v34 = vpop.f32.mrf.mxu2 }
 0x109   :  { %v885_v41 = vpop.f32.mrf.mxu2 }
 0x10a   :  { %v886_v15 = vadd.f32 %v885_v41, %v873_v2 }
 0x10c   :  { %v890_v46 = vmax.f32 %v886_v15, 0.0 }
 0x10e   :  { %v892_v58 = vpack.c.bf16 %v890_v46, %v890_v46 }
 0x110   :  { %1112 = vmatmul.bf16.vlgmr.msrb.gmra.mxu3 %v892_v58  ;;  %1138 = vmatmul.bf16.vlgmr.msrb.gmra.mxu2 %v892_v58 }
 0x111   :  { %v887_v16 = vpop.f32.mrf.mxu2 }
 0x157   :  { %v1100_v28 = vpop.f32.mrf.mxu1  ;;  %v1126_v29 = vpop.f32.mrf.mxu0 }
 0x158   :  { %v1101_v47 = vadd.f32 %v1100_v28, %v927_v44  ;;  %v1127_v48 = vadd.f32 %v1126_v29, %v928_v45 }
 0x15f   :  { %v1102_v30 = vpop.f32.mrf.mxu1  ;;  %v1128_v31 = vpop.f32.mrf.mxu0 }
 0x193   :  { %v1113_v49 = vpop.f32.mrf.mxu3  ;;  %v1139_v50 = vpop.f32.mrf.mxu2 }
 0x194   :  { %v1114_v51 = vadd.f32 %v1113_v49, %v1101_v47  ;;  %v1140_v52 = vadd.f32 %v1139_v50, %v1127_v48 }
 0x196   :  { %v1143_v54 = vmax.f32 %v1114_v51, 0.0  ;;  %v1144_v56 = vmax.f32 %v1140_v52, 0.0 }
 0x198   :  { %v1145_v57 = vpack.c.bf16 %v1143_v54, %v1143_v54  ;;  %v1146_v59 = vpack.c.bf16 %v1144_v56, %v1144_v56 }
 0x19a   :  { %1287 = vmatmul.bf16.vlgmr.msra.gmra.mxu1 %v1145_v57  ;;  %1300 = vmatmul.bf16.vlgmr.msra.gmra.mxu3 %v1146_v59 }
 0x19b   :  { %v1115_v60 = vpop.f32.mrf.mxu3  ;;  %v1141_v61 = vpop.f32.mrf.mxu2 }
 0x217   :  { %v1288_v1 = vpop.f32.mrf.mxu1 }
 0x218   :  { %v1289_v5 = vadd.f32 %v2201_v4, %v1288_v1 }
 0x21d   :  { %v1301_v6 = vpop.f32.mrf.mxu3 }
 0x21e   :  { %v1302_v7 = vadd.f32 %v1301_v6, %v1289_v5 }
 0x21f   :  { %v1290_v8 = vpop.f32.mrf.mxu1 }
 0x220   :  { %v1305_v9 = vmax.f32 %v1302_v7, 0.0 }
 0x222   :  { %v1306_v10 = vpack.c.bf16 %v1305_v9, %v1305_v9 }
 0x224   :  { %1383 = vmatmul.bf16.vlgmr.msra.gmra.mxu0 %v1306_v10 }
 0x225   :  { %v1303_v11 = vpop.f32.mrf.mxu3 }
 0x2a1   :  { %v1384_v55 = vpop.f32.mrf.mxu0 }
 0x2a2   :  { %v1385_v3 = vadd.f32 %v2202_v12, %v1384_v55 }
 0x2a4   :  { %v1389_v34 = vsel %vm1388_vm1, %v1385_v3, -inf }
 0x2a5   :  { %1390 = vmax.xlane.f32.xlu0 %v1389_v34 }
 0x2a9   :  { %v1386_v13 = vpop.f32.mrf.mxu0 }
 0x318   :  { %v1391_v14 = vpop.xlane.xlu0 %1390 }
 0x319   :  { %v1392_v2 = vsub.f32 %v1385_v3, %v1391_v14 }
 0x31b   :  { %v1393_v41 = vmul.f32 1.442695, %v1392_v2 }
 0x31d   :  { %2203 = vpow2.f32 %v1393_v41 }
 0x323   :  { %v2204_v15 = vpop.eup %2203 }
 0x324   :  { %v1395_v46 = vsel %vm1388_vm1, %v2204_v15, 0.0 }
 0x325   :  { %1396 = vadd.xlane.f32.xlu0 %v1395_v46 }
 0x398   :  { %v1397_v58 = vpop.xlane.xlu0 %1396 }
 0x399   :  { %2205 = vlog2.f32 %v1397_v58 }
 0x39f   :  { %v2206_v16 = vpop.eup %2205 }
 0x3a0   :  { %v1399_v53 = vmul.f32 0.6931472, %v2206_v16 }
 0x3a2   :  { %v1400_v17 = vadd.f32 %v1399_v53, %v1391_v14 }
 0x3a4   :  { %v1401_v18 = vsub.f32 %v1385_v3, %v1400_v17 }
 0x3a6   :  { %1402 = vst.msk [vmem:[#allocation8] sm:$0xff] %vm1388_vm1, %v1401_v18 }
 0x3a7   :  { %1413 = dma.vmem_to_hbm [thread:$0]  %s1409_s7, 128, %s1411_s10, [#allocation4]  }
 0x3a8   :  { %2307 = dma.done.wait [#allocation4], 128  }
 0x3a9   :  { %2308 = vsyncadd [#allocation4], 4294967168 }
 0x3aa   :  { %1418 = vsyncpa [#allocation3], 1 }
 0x3ab   :  { %1419 = vsyncpa [#allocation6], 1 }
 0x3ac   :  { %1420 = vsyncpa [#allocation4], 1 }

</bundles_post_ra>
